<compile_context>
chip_gen: v5e
topology: v5e:2x2
jax: 0.10.0
libtpu: 0.0.40
codegen_flags: <defaults>
</compile_context>

<pallas_src>
import jax
import jax.numpy as jnp
from jax.experimental import pallas as pl
from jax.experimental.pallas import tpu as pltpu

EPSILON = 0.1            # module default
LANES = 128              # lane width
MAX_TILE_ROWS = 2048     # 2048 x 128 x 4B = 1 MiB per input block
MU_PAD = 1e30            # padded mu -> exp(-|logit - mu| / b) underflows to 0


def _logit_laplace_kernel(x_ref, mu_ref, lnb_ref, out_ref):
    """Per-block elementwise Logit-Laplace term, folded to an (8,128) partial sum."""
    x = x_ref[...]
    mu = mu_ref[...]
    ln_b = lnb_ref[...]

    # map_pixels: (1 - 2*eps) * x + eps
    xm = (1.0 - 2.0 * EPSILON) * x + EPSILON

    inv_b = jnp.exp(-ln_b)                       # EUP exp  (== 1/b)
    prod = xm * (1.0 - xm)
    inv_prod = 1.0 / prod                        # EUP reciprocal
    # logit(xm) = log(xm / (1 - xm)) = log(xm * xm * inv_prod)  (reuses inv_prod)
    logit_xm = jnp.log(xm * xm * inv_prod)       # EUP log
    # term = 1/(2*b*xm*(1-xm)) * exp(-|logit(xm) - mu| / b)
    term = (0.5 * inv_b * inv_prod) * jnp.exp(-jnp.abs(logit_xm - mu) * inv_b)  # EUP exp

    # Fold the (tile_rows, 128) block into an (8, 128) vreg-shaped partial sum
    # with pure VPU adds; the full cross-lane reduce happens once, outside.
    tile_rows = term.shape[0]
    out_ref[...] = jnp.sum(term.reshape(tile_rows // 8, 8, LANES), axis=0)


@jax.jit
def logit_laplace_loss(x, mu, ln_b):
    """Computes the Logit-Laplace loss (scalar) for NCHW float32 inputs."""
    assert x.ndim == 4, "expected input to be 4d"
    assert x.dtype == jnp.float32, "expected input to have type float"
    n = x.size  # static under jit

    # Pick the block size: up to 1 MiB/input, shrink for small tensors.
    rows_needed = -(-n // LANES)                           # cdiv(n, 128)
    if rows_needed >= MAX_TILE_ROWS:
        tile_rows = MAX_TILE_ROWS
    else:
        tile_rows = max(8, ((rows_needed + 7) // 8) * 8)   # round up to sublane mult.
    block_elems = tile_rows * LANES
    padded = ((n + block_elems - 1) // block_elems) * block_elems
    pad = padded - n

    def prep(a, pad_value):
        a = a.reshape(-1)
        if pad:  # only emit the pad op when actually needed
            a = jnp.pad(a, (0, pad), constant_values=pad_value)
        return a.reshape(-1, LANES)

    # Pad values chosen so the padded elements contribute exactly 0:
    #   xm = 0.5, b = 1, |logit(0.5) - 1e30| = 1e30 -> exp(-1e30) == 0.0 in f32.
    x2 = prep(x, 0.5)
    mu2 = prep(mu, MU_PAD)
    lnb2 = prep(ln_b, 0.0)

    num_rows = x2.shape[0]
    num_blocks = num_rows // tile_rows
    grid = (num_blocks,)

    in_spec = pl.BlockSpec((tile_rows, LANES), lambda i: (i, 0))
    out_spec = pl.BlockSpec((8, LANES), lambda i: (i, 0))

    partials = pl.pallas_call(
        _logit_laplace_kernel,
        out_shape=jax.ShapeDtypeStruct((num_blocks * 8, LANES), jnp.float32),
        grid_spec=pltpu.PrefetchScalarGridSpec(
            num_scalar_prefetch=0,
            grid=grid,
            in_specs=[in_spec, in_spec, in_spec],
            out_specs=out_spec,
        ),
        compiler_params=pltpu.CompilerParams(
            dimension_semantics=("parallel",)),
    )(x2, mu2, lnb2)

    # Tiny hierarchical reduction + mean + negation outside the kernel.
    return -jnp.sum(partials) / jnp.float32(n)


def _reference(x, mu, ln_b, epsilon=EPSILON):
    xm = (1.0 - 2.0 * epsilon) * x + epsilon
    b = jnp.exp(ln_b)
    logit_xm = jnp.log(xm) - jnp.log(1.0 - xm)
    return -jnp.mean(1.0 / (2.0 * b * xm * (1.0 - xm))
                     * jnp.exp(-jnp.abs(logit_xm - mu) / b))


if __name__ == "__main__":
    key = jax.random.PRNGKey(0)
    k1, k2, k3 = jax.random.split(key, 3)

    B, C, H, W = 2, 4, 16, 16
    # x is an image-like tensor in (0, 1)
    x = jax.random.uniform(k1, (B, C, H, W), dtype=jnp.float32,
                           minval=0.01, maxval=0.99)
    mu = jax.random.normal(k2, (B, C, H, W), dtype=jnp.float32)
    ln_b = 0.1 * jax.random.normal(k3, (B, C, H, W), dtype=jnp.float32)

    loss = logit_laplace_loss(x, mu, ln_b)
    loss = jax.block_until_ready(loss)

    ref = _reference(x, mu, ln_b)
    assert jnp.allclose(loss, ref, rtol=1e-5, atol=1e-6), (loss, ref)

    print("KERNEL_OK")
</pallas_src>

<mosaic_0001>
module attributes {stable_mosaic.version = 11 : i64} {
  func.func @_logit_laplace_kernel(%arg0: i32, %arg1: memref<16x128xf32, #tpu.memory_space<vmem>>, %arg2: memref<16x128xf32, #tpu.memory_space<vmem>>, %arg3: memref<16x128xf32, #tpu.memory_space<vmem>>, %arg4: memref<8x128xf32, #tpu.memory_space<vmem>>) attributes {dimension_semantics = [#tpu.dimension_semantics<parallel>], iteration_bounds = array<i64: 1>, scalar_prefetch = 0 : i64, scratch_operands = 0 : i64, tpu.core_type = #tpu.core_type<tc>, window_params = [{transform_indices = @transform_0, window_bounds = array<i64: 16, 128>}, {transform_indices = @transform_1, window_bounds = array<i64: 16, 128>}, {transform_indices = @transform_2, window_bounds = array<i64: 16, 128>}, {transform_indices = @transform_3, window_bounds = array<i64: 8, 128>}]} {
    %c0 = arith.constant 0 : index
    %c0_0 = arith.constant 0 : index
    %0 = vector.load %arg1[%c0, %c0_0] : memref<16x128xf32, #tpu.memory_space<vmem>>, vector<16x128xf32>
    %c0_1 = arith.constant 0 : index
    %c0_2 = arith.constant 0 : index
    %1 = vector.load %arg2[%c0_1, %c0_2] : memref<16x128xf32, #tpu.memory_space<vmem>>, vector<16x128xf32>
    %c0_3 = arith.constant 0 : index
    %c0_4 = arith.constant 0 : index
    %2 = vector.load %arg3[%c0_3, %c0_4] : memref<16x128xf32, #tpu.memory_space<vmem>>, vector<16x128xf32>
    %cst = arith.constant 8.000000e-01 : f32
    %3 = vector.broadcast %cst : f32 to vector<16x128xf32>
    %4 = arith.mulf %3, %0 : vector<16x128xf32>
    %cst_5 = arith.constant 1.000000e-01 : f32
    %5 = vector.broadcast %cst_5 : f32 to vector<16x128xf32>
    %6 = arith.addf %4, %5 : vector<16x128xf32>
    %cst_6 = arith.constant 0.000000e+00 : f32
    %7 = vector.broadcast %cst_6 : f32 to vector<16x128xf32>
    %8 = arith.subf %7, %2 : vector<16x128xf32>
    %9 = math.exp %8 : vector<16x128xf32>
    %cst_7 = arith.constant 1.000000e+00 : f32
    %10 = vector.broadcast %cst_7 : f32 to vector<16x128xf32>
    %11 = arith.subf %10, %6 : vector<16x128xf32>
    %12 = arith.mulf %6, %11 : vector<16x128xf32>
    %cst_8 = arith.constant 1.000000e+00 : f32
    %13 = vector.broadcast %cst_8 : f32 to vector<16x128xf32>
    %14 = arith.divf %13, %12 : vector<16x128xf32>
    %15 = arith.mulf %6, %6 : vector<16x128xf32>
    %16 = arith.mulf %15, %14 : vector<16x128xf32>
    %17 = math.log %16 : vector<16x128xf32>
    %cst_9 = arith.constant 5.000000e-01 : f32
    %18 = vector.broadcast %cst_9 : f32 to vector<16x128xf32>
    %19 = arith.mulf %18, %9 : vector<16x128xf32>
    %20 = arith.mulf %19, %14 : vector<16x128xf32>
    %21 = arith.subf %17, %1 : vector<16x128xf32>
    %22 = math.absf %21 : vector<16x128xf32>
    %cst_10 = arith.constant 0.000000e+00 : f32
    %23 = vector.broadcast %cst_10 : f32 to vector<16x128xf32>
    %24 = arith.subf %23, %22 : vector<16x128xf32>
    %25 = arith.mulf %24, %9 : vector<16x128xf32>
    %26 = math.exp %25 : vector<16x128xf32>
    %27 = arith.mulf %20, %26 : vector<16x128xf32>
    %28 = vector.shape_cast %27 : vector<16x128xf32> to vector<2x8x128xf32>
    %cst_11 = arith.constant dense<0.000000e+00> : vector<8x128xf32>
    %29 = vector.multi_reduction <add>, %28, %cst_11 [0] : vector<2x8x128xf32> to vector<8x128xf32>
    %c0_12 = arith.constant 0 : index
    %c0_13 = arith.constant 0 : index
    %30 = vector.load %arg4[%c0_12, %c0_13] : memref<8x128xf32, #tpu.memory_space<vmem>>, vector<8x128xf32>
    tpu.vector_store %arg4[%c0_12, %c0_13], %29 {strides = array<i32>} : memref<8x128xf32, #tpu.memory_space<vmem>>, vector<8x128xf32>,
    return
  }
  func.func @transform_0(%arg0: i32) -> (i32, i32) {
    %c0_i32 = arith.constant 0 : i32
    %c0_i32_0 = arith.constant 0 : i32
    return %arg0, %c0_i32 : i32, i32
  }
  func.func @transform_1(%arg0: i32) -> (i32, i32) {
    %c0_i32 = arith.constant 0 : i32
    %c0_i32_0 = arith.constant 0 : i32
    return %arg0, %c0_i32 : i32, i32
  }
  func.func @transform_2(%arg0: i32) -> (i32, i32) {
    %c0_i32 = arith.constant 0 : i32
    %c0_i32_0 = arith.constant 0 : i32
    return %arg0, %c0_i32 : i32, i32
  }
  func.func @transform_3(%arg0: i32) -> (i32, i32) {
    %c0_i32 = arith.constant 0 : i32
    %c0_i32_0 = arith.constant 0 : i32
    return %arg0, %c0_i32 : i32, i32
  }
}

</mosaic_0001>

<bundles_post_ra>
// kernel: logit_laplace_loss.1
= control target key start
LH: loop header
LB: loop body
LE: loop exit
PB: predicated region body
PF: predicated region fallthrough
CT: control target
= control target key end

     0   :  { %s153_s0 = inlined_call_operand.vmem [shape: f32[16,128], index: 0, kind: input, shape index: {}]   ;;  %s154_s2 = inlined_call_operand.vmem [shape: f32[16,128], index: 2, kind: input, shape index: {}]   ;;  %s155_s1 = inlined_call_operand.vmem [shape: f32[16,128], index: 1, kind: input, shape index: {}]   ;;  %s156_s3 = inlined_call_operand.vmem [shape: f32[8,128], index: 3, kind: output, shape index: {}]  }
   0x1   :  { %v14_v0 = vld [vmem:[%s153_s0] sm:$0xff]  ;;  %v15_v1 = vld [vmem:[%s153_s0 + $0x8] sm:$0xff] }
   0x2   :  { %v20_v2 = vmul.f32 0.8, %v14_v0  ;;  %v21_v3 = vmul.f32 0.8, %v15_v1  ;;  %v18_v26 = vld [vmem:[%s154_s2] sm:$0xff]  ;;  %v19_v29 = vld [vmem:[%s154_s2 + $0x8] sm:$0xff] }
   0x3   :  { %v24_v33 = vsub.f32 0.0, %v18_v26  ;;  %v25_v36 = vsub.f32 0.0, %v19_v29  ;;  %v16_v41 = vld [vmem:[%s155_s1] sm:$0xff]  ;;  %v17_v43 = vld [vmem:[%s155_s1 + $0x8] sm:$0xff] }
   0x4   :  { %v22_v4 = vadd.f32 0.1, %v20_v2  ;;  %v23_v5 = vadd.f32 0.1, %v21_v3 }
   0x5   :  { %v26_v38 = vmul.f32 1.442695, %v24_v33  ;;  %v28_v39 = vmul.f32 1.442695, %v25_v36 }
   0x6   :  { %v30_v6 = vsub.f32 1.0, %v22_v4  ;;  %v31_v7 = vsub.f32 1.0, %v23_v5  ;;  %v64_v25 = vmul.f32 %v22_v4, %v22_v4  ;;  %v65_v28 = vmul.f32 %v23_v5, %v23_v5 }
   0x8   :  { %v32_v8 = vmul.f32 %v30_v6, %v22_v4  ;;  %v33_v9 = vmul.f32 %v31_v7, %v23_v5 }
   0xa   :  { %96 = vrcp.f32 %v32_v8  ;;  %vm39_vm0 = vweird.f32 %v32_v8  ;;  %v45_v13 = vand.u32 2147483648, %v32_v8  ;;  %v43_v16 = vand.u32 2147483647, %v32_v8 }
   0xb   :  { %98 = vrcp.f32 %v33_v9  ;;  %v60_v17 = vand.u32 2147483648, %v33_v9  ;;  %vm54_vm2 = vweird.f32 %v33_v9  ;;  %v58_v19 = vand.u32 2147483647, %v33_v9 }
   0xc   :  { %v46_v21 = vor.u32 1.1754944e-38, %v45_v13  ;;  %vm44_vm5 = vcmp.eq.f32.partialorder %v43_v16, 8.507059e+37 }
   0xd   :  { %v61_v24 = vor.u32 1.1754944e-38, %v60_v17  ;;  %vm59_vm7 = vcmp.eq.f32.partialorder %v58_v19, 8.507059e+37 }
  0x10   :  { %v97_v10 = vpop.eup %96 }
  0x11   :  { %v99_v11 = vpop.eup %98  ;;  %v35_v12 = vmul.f32 %v97_v10, %v32_v8  ;;  %vm40_vm1 = vweird.f32 %v97_v10 }
  0x12   :  { %v50_v14 = vmul.f32 %v99_v11, %v33_v9  ;;  %vm55_vm3 = vweird.f32 %v99_v11  ;;  %vm41_vm4 = vmor %vm39_vm0, %vm40_vm1 }
  0x13   :  { %v36_v15 = vsub.f32 1.0, %v35_v12  ;;  %vm56_vm6 = vmor %vm54_vm2, %vm55_vm3 }
  0x14   :  { %v51_v18 = vsub.f32 1.0, %v50_v14 }
  0x15   :  { %v37_v20 = vmul.f32 %v97_v10, %v36_v15 }
  0x16   :  { %v52_v22 = vmul.f32 %v99_v11, %v51_v18 }
  0x17   :  { %v38_v23 = vadd.f32 %v97_v10, %v37_v20 }
  0x18   :  { %v53_v27 = vadd.f32 %v99_v11, %v52_v22 }
  0x19   :  { %v42_v30 = vsel %vm41_vm4, %v97_v10, %v38_v23 }
  0x1a   :  { %v47_v31 = vsel %vm44_vm5, %v46_v21, %v42_v30  ;;  %v57_v32 = vsel %vm56_vm6, %v99_v11, %v53_v27 }
  0x1b   :  { %v62_v34 = vsel %vm59_vm7, %v61_v24, %v57_v32  ;;  %v66_v35 = vmul.f32 %v64_v25, %v47_v31 }
  0x1c   :  { %v67_v37 = vmul.f32 %v65_v28, %v62_v34 }
  0x1d   :  { %100 = vlog2.f32 %v66_v35 }
  0x1e   :  { %102 = vlog2.f32 %v67_v37 }
  0x1f   :  { %104 = vpow2.f32 %v26_v38 }
  0x20   :  { %106 = vpow2.f32 %v28_v39 }
  0x23   :  { %v101_v40 = vpop.eup %100 }
  0x24   :  { %v103_v42 = vpop.eup %102  ;;  %v69_v44 = vmul.f32 0.6931472, %v101_v40 }
  0x25   :  { %v71_v45 = vmul.f32 0.6931472, %v103_v42  ;;  %v105_v49 = vpop.eup %104 }
  0x26   :  { %v76_v46 = vsub.f32 %v69_v44, %v16_v41  ;;  %v107_v51 = vpop.eup %106  ;;  %v72_v57 = vmul.f32 0.5, %v105_v49 }
  0x27   :  { %v77_v47 = vsub.f32 %v71_v45, %v17_v43  ;;  %v73_v59 = vmul.f32 0.5, %v107_v51 }
  0x28   :  { %v78_v48 = vand.u32 2147483647, %v76_v46  ;;  %v74_v60 = vmul.f32 %v72_v57, %v47_v31 }
  0x29   :  { %v79_v50 = vand.u32 2147483647, %v77_v47  ;;  %v75_v61 = vmul.f32 %v73_v59, %v62_v34 }
  0x2a   :  { %v80_v52 = vsub.f32 0.0, %v78_v48 }
  0x2b   :  { %v81_v53 = vsub.f32 0.0, %v79_v50 }
  0x2c   :  { %v82_v54 = vmul.f32 %v105_v49, %v80_v52 }
  0x2d   :  { %v83_v55 = vmul.f32 %v107_v51, %v81_v53 }
  0x2e   :  { %v84_v56 = vmul.f32 1.442695, %v82_v54 }
  0x2f   :  { %v86_v58 = vmul.f32 1.442695, %v83_v55 }
  0x30   :  { %108 = vpow2.f32 %v84_v56 }
  0x31   :  { %110 = vpow2.f32 %v86_v58 }
  0x36   :  { %v109_v62 = vpop.eup %108 }
  0x37   :  { %v111_v63 = vpop.eup %110  ;;  %v88_v0 = vmul.f32 %v109_v62, %v74_v60 }
  0x38   :  { %v89_v1 = vmul.f32 %v111_v63, %v75_v61 }
  0x3a   :  { %v90_v2 = vadd.f32 %v89_v1, %v88_v0 }
  0x3c   :  { %91 = vst [vmem:[%s156_s3] sm:$0xff] %v90_v2 }

</bundles_post_ra>
